<compile_context>
chip_gen: v7x
topology: tpu7x:2x2x1
jax: 0.10.0
libtpu: 0.0.40
codegen_flags: <defaults>
</compile_context>

<pallas_src>
import functools

import jax
import jax.numpy as jnp
from jax.experimental import pallas as pl
from jax.experimental.pallas import tpu as pltpu

MARGIN = 0.35
GAMMA = 128.0
NEG_INF = -99999999.0


def _round_up(x, m):
    return ((x + m - 1) // m) * m


def normalize_kernel(x_ref, o_ref):
    x = x_ref[...].astype(jnp.float32)                      # (TQ, D)
    sq = jnp.sum(x * x, axis=1, keepdims=True)              # (TQ, 1)
    # F.normalize: x / max(||x||, 1e-12)  ==  x * rsqrt(max(||x||^2, 1e-24))
    o_ref[...] = x * jax.lax.rsqrt(jnp.maximum(sq, 1e-24))


def ucircle_block_kernel(tcol_ref, trow_ref, q_ref, kt_ref, out_ref,
                         m_p, s_p, m_n, s_n, *, n_valid):
    kv = pl.program_id(1)

    @pl.when(kv == 0)
    def _():
        m_p[...] = jnp.full_like(m_p, NEG_INF)
        m_n[...] = jnp.full_like(m_n, NEG_INF)
        s_p[...] = jnp.zeros_like(s_p)
        s_n[...] = jnp.zeros_like(s_n)

    q = q_ref[...]                               # (TQ, D) normalized queries
    kt = kt_ref[...]                             # (D, TK) normalized keys (pre-transposed)
    tq, tk = q.shape[0], kt.shape[1]

    # Similarity slab on the MXU; plain A @ B, no in-kernel transpose.
    dist = jnp.dot(q, kt, preferred_element_type=jnp.float32)   # (TQ, TK)

    t_q = tcol_ref[...]                          # (TQ, 1) int32
    t_k = trow_ref[...]                          # (1, TK) int32

    # Masks from small (TQ,1)/(1,TK) iotas; broadcasting happens inside the compares.
    row_g = jax.lax.broadcasted_iota(jnp.int32, (tq, 1), 0) + pl.program_id(0) * tq
    col_g = jax.lax.broadcasted_iota(jnp.int32, (1, tk), 1) + kv * tk
    col_valid = col_g < n_valid                  # (1, TK): drop padded key columns

    same = t_q == t_k                            # (TQ, TK)
    valid_p = same & (t_q == 1) & (row_g != col_g) & col_valid   # class-1 positives, off-diag
    valid_n = jnp.logical_not(same) & col_valid                  # negatives

    delta_p = 1.0 - MARGIN
    logit_p = -GAMMA * jnp.maximum(1.0 + MARGIN - dist, 0.0) * (dist - delta_p)
    logit_n = GAMMA * jnp.maximum(dist + MARGIN, 0.0) * (dist - MARGIN)

    # Online (streaming) LSE update for the positive and negative sets.
    m_p_new = jnp.maximum(
        m_p[...], jnp.max(jnp.where(valid_p, logit_p, NEG_INF), axis=1, keepdims=True))
    m_n_new = jnp.maximum(
        m_n[...], jnp.max(jnp.where(valid_n, logit_n, NEG_INF), axis=1, keepdims=True))

    # valid_p / valid_n are disjoint -> a single exp over the slab (one EUP pass).
    x = jnp.where(valid_p, logit_p - m_p_new,
                  jnp.where(valid_n, logit_n - m_n_new, NEG_INF))
    e = jnp.exp(x)
    sum_p = jnp.sum(jnp.where(valid_p, e, 0.0), axis=1, keepdims=True)
    sum_n = jnp.sum(jnp.where(valid_n, e, 0.0), axis=1, keepdims=True)

    s_p[...] = s_p[...] * jnp.exp(m_p[...] - m_p_new) + sum_p
    s_n[...] = s_n[...] * jnp.exp(m_n[...] - m_n_new) + sum_n
    m_p[...] = m_p_new
    m_n[...] = m_n_new

    @pl.when(kv == pl.num_programs(1) - 1)
    def _():
        z = (m_p[...] + jnp.log(s_p[...])) + (m_n[...] + jnp.log(s_n[...]))
        # softplus(z) = max(z, 0) + log(1 + exp(-|z|))
        out_ref[...] = jnp.maximum(z, 0.0) + jnp.log(1.0 + jnp.exp(-jnp.abs(z)))


def _vmem_limit_bytes(tq, tk, d):
    f32 = 4
    io = 2 * f32 * (tq * d + d * tk + tq * 128 + 8 * tk + tq * 128)  # double-buffered blocks
    scratch = 4 * f32 * tq * 128                                     # (TQ,1) pads to 128 lanes
    slabs = 12 * f32 * tq * tk                                       # elementwise temporaries
    budget = int(1.25 * (io + scratch + slabs))
    return min(max(budget, 16 << 20), 48 << 20)


def ucircle_loss(embedding, targets, *, tq=128, tk_max=512):
    """embedding: (N, D) float32, targets: (N,) int -> scalar float32 loss."""
    N, D = embedding.shape
    TK = min(tk_max, _round_up(N, 128))          # key block: lane dim, multiple of 128
    N_pad = _round_up(N, TK)                     # multiple of TK (and of 128)
    TQ = tq if N_pad % tq == 0 else 128          # query block: multiple of 8, divides N_pad
    num_q = N_pad // TQ
    num_k = N_pad // TK

    emb = embedding.astype(jnp.float32)
    tgt = targets.astype(jnp.int32)
    if N_pad != N:
        emb = jnp.pad(emb, ((0, N_pad - N), (0, 0)))
        tgt = jnp.pad(tgt, (0, N_pad - N), constant_values=-1)

    # Kernel 1: row-tiled L2 normalize, done once (reused as queries and keys).
    emb_n = pl.pallas_call(
        normalize_kernel,
        out_shape=jax.ShapeDtypeStruct((N_pad, D), jnp.float32),
        grid_spec=pltpu.PrefetchScalarGridSpec(
            num_scalar_prefetch=0,
            grid=(num_q,),
            in_specs=[pl.BlockSpec((TQ, D), lambda i: (i, 0))],
            out_specs=pl.BlockSpec((TQ, D), lambda i: (i, 0)),
        ),
        compiler_params=pltpu.CompilerParams(dimension_semantics=("parallel",)),
    )(emb)

    # Keys pre-transposed once in XLA so the kernel contraction needs no transpose.
    emb_nT = emb_n.T                             # (D, N_pad)
    tgt_col = tgt.reshape(N_pad, 1)
    tgt_row = tgt.reshape(1, N_pad)

    kernel = functools.partial(ucircle_block_kernel, n_valid=N)
    per_row = pl.pallas_call(
        kernel,
        out_shape=jax.ShapeDtypeStruct((N_pad, 1), jnp.float32),
        grid_spec=pltpu.PrefetchScalarGridSpec(
            num_scalar_prefetch=0,
            grid=(num_q, num_k),                 # reduction (key) axis last
            in_specs=[
                pl.BlockSpec((TQ, 1), lambda qi, ki: (qi, 0)),   # query-block targets
                pl.BlockSpec((1, TK), lambda qi, ki: (0, ki)),   # key-block targets
                pl.BlockSpec((TQ, D), lambda qi, ki: (qi, 0)),   # query rows
                pl.BlockSpec((D, TK), lambda qi, ki: (0, ki)),   # streamed key block (transposed)
            ],
            out_specs=pl.BlockSpec((TQ, 1), lambda qi, ki: (qi, 0)),
            scratch_shapes=[pltpu.VMEM((TQ, 1), jnp.float32)] * 4,  # m_p, s_p, m_n, s_n
        ),
        compiler_params=pltpu.CompilerParams(
            # TODO(synk): on v7x, verify with xprof that the "parallel" query axis is
            # actually sharded across both TensorCores; switch to CORE_PARALLEL if not.
            dimension_semantics=("parallel", "arbitrary"),
            vmem_limit_bytes=_vmem_limit_bytes(TQ, TK, D),
        ),
    )(tgt_col, tgt_row, emb_n, emb_nT)

    # mean(softplus) / N == sum / N^2; padded query rows sliced away.
    return jnp.sum(per_row[:N, 0]) / jnp.float32(N * N)


def ucircle_loss_ref(embedding, targets):
    """Pure-JAX reference mirroring the PyTorch module (f32 matmul)."""
    N = embedding.shape[0]
    norm = jnp.sqrt(jnp.sum(embedding * embedding, axis=1, keepdims=True))
    emb = embedding / jnp.maximum(norm, 1e-12)
    dist = jnp.matmul(emb, emb.T, precision=jax.lax.Precision.HIGHEST)
    t = targets.reshape(N, 1).astype(jnp.float32)
    is_pos_1 = (t == t.T).astype(jnp.float32) * (t == 1.0).astype(jnp.float32)
    is_neg = (t != t.T).astype(jnp.float32)
    is_pos_1 = is_pos_1 - jnp.eye(N, dtype=jnp.float32)
    s_p1 = dist * is_pos_1
    s_n = dist * is_neg
    alpha_p1 = jnp.clip(-s_p1 + 1.0 + MARGIN, 0.0, None)
    alpha_n = jnp.clip(s_n + MARGIN, 0.0, None)
    logit_p1 = -GAMMA * alpha_p1 * (s_p1 - (1.0 - MARGIN)) + NEG_INF * (1.0 - is_pos_1)
    logit_n = GAMMA * alpha_n * (s_n - MARGIN) + NEG_INF * (1.0 - is_neg)
    z = jax.scipy.special.logsumexp(logit_p1, axis=1) + jax.scipy.special.logsumexp(logit_n, axis=1)
    sp = jnp.maximum(z, 0.0) + jnp.log1p(jnp.exp(-jnp.abs(z)))
    return jnp.mean(sp) / N


if __name__ == "__main__":
    key = jax.random.PRNGKey(0)
    k_emb, k_tgt = jax.random.split(key)

    # Primary small test; labels in {0, 1, 2} ("1" is the positive class).
    N, D = 8, 32
    embedding = jax.random.normal(k_emb, (N, D), dtype=jnp.float32)
    targets = jax.random.randint(k_tgt, (N,), 0, 3, dtype=jnp.int32)

    loss = ucircle_loss(embedding, targets)
    jax.block_until_ready(loss)
    ref = ucircle_loss_ref(embedding, targets)
    assert jnp.allclose(loss, ref, rtol=1e-3, atol=1e-3), (loss, ref)

    # Secondary check exercising the streamed multi-block (key-axis) path + padding.
    k_emb2, k_tgt2 = jax.random.split(jax.random.PRNGKey(1))
    N2, D2 = 600, 32
    emb2 = jax.random.normal(k_emb2, (N2, D2), dtype=jnp.float32)
    tgt2 = jax.random.randint(k_tgt2, (N2,), 0, 4, dtype=jnp.int32)
    loss2 = ucircle_loss(emb2, tgt2)
    jax.block_until_ready(loss2)
    ref2 = ucircle_loss_ref(emb2, tgt2)
    assert jnp.allclose(loss2, ref2, rtol=1e-3, atol=1e-3), (loss2, ref2)

    print("KERNEL_OK")
</pallas_src>

<mosaic_0001>
module attributes {stable_mosaic.version = 11 : i64} {
  func.func @normalize_kernel(%arg0: i32, %arg1: memref<128x32xf32, #tpu.memory_space<vmem>>, %arg2: memref<128x32xf32, #tpu.memory_space<vmem>>) attributes {dimension_semantics = [#tpu.dimension_semantics<parallel>], iteration_bounds = array<i64: 1>, scalar_prefetch = 0 : i64, scratch_operands = 0 : i64, tpu.core_type = #tpu.core_type<tc>, window_params = [{transform_indices = @transform_0, window_bounds = array<i64: 128, 32>}, {transform_indices = @transform_1, window_bounds = array<i64: 128, 32>}]} {
    %c0 = arith.constant 0 : index
    %c0_0 = arith.constant 0 : index
    %0 = vector.load %arg1[%c0, %c0_0] : memref<128x32xf32, #tpu.memory_space<vmem>>, vector<128x32xf32>
    %1 = arith.mulf %0, %0 : vector<128x32xf32>
    %cst = arith.constant dense<0.000000e+00> : vector<128xf32>
    %2 = vector.multi_reduction <add>, %1, %cst [1] : vector<128x32xf32> to vector<128xf32>
    %3 = vector.shape_cast %2 : vector<128xf32> to vector<128x1xf32>
    %cst_1 = arith.constant 1.000000e-24 : f32
    %4 = vector.broadcast %cst_1 : f32 to vector<128x1xf32>
    %5 = arith.maximumf %3, %4 : vector<128x1xf32>
    %6 = math.rsqrt %5 : vector<128x1xf32>
    %7 = vector.broadcast %6 : vector<128x1xf32> to vector<128x32xf32>
    %8 = arith.mulf %0, %7 : vector<128x32xf32>
    %c0_2 = arith.constant 0 : index
    %c0_3 = arith.constant 0 : index
    %9 = vector.load %arg2[%c0_2, %c0_3] : memref<128x32xf32, #tpu.memory_space<vmem>>, vector<128x32xf32>
    tpu.vector_store %arg2[%c0_2, %c0_3], %8 {strides = array<i32>} : memref<128x32xf32, #tpu.memory_space<vmem>>, vector<128x32xf32>,
    return
  }
  func.func @transform_0(%arg0: i32) -> (i32, i32) {
    %c0_i32 = arith.constant 0 : i32
    %c0_i32_0 = arith.constant 0 : i32
    return %arg0, %c0_i32 : i32, i32
  }
  func.func @transform_1(%arg0: i32) -> (i32, i32) {
    %c0_i32 = arith.constant 0 : i32
    %c0_i32_0 = arith.constant 0 : i32
    return %arg0, %c0_i32 : i32, i32
  }
}

</mosaic_0001>

<bundles_post_ra>
// kernel: tpu_custom_call.1
= control target key start
LH: loop header
LB: loop body
LE: loop exit
PB: predicated region body
PF: predicated region fallthrough
CT: control target
= control target key end

     0   :  { %vm40_vm0 = vcmask 261120   ;;  %s407_s0 = inlined_call_operand.vmem [shape: f32[128,32], index: 0, kind: input, shape index: {}]   ;;  %s408_s1 = inlined_call_operand.vmem [shape: f32[128,32], index: 1, kind: output, shape index: {}]  }
   0x1   :  { %v202_v0 = vld [vmem:[%s407_s0 + $0x10] sm:$0xff]  ;;  %v207_v1 = vld [vmem:[%s407_s0] sm:$0xff]  ;;  %v212_v2 = vld [vmem:[%s407_s0 + $0x18] sm:$0xff] }
   0x2   :  { %v26_v3 = vmul.f32 %v202_v0, %v202_v0  ;;  %v24_v4 = vmul.f32 %v207_v1, %v207_v1  ;;  %v27_v5 = vmul.f32 %v212_v2, %v212_v2  ;;  %v223_v6 = vld [vmem:[%s407_s0 + $0x8] sm:$0xff]  ;;  %v235_v9 = vld [vmem:[%s407_s0 + $0x20] sm:$0xff]  ;;  %v248_v16 = vld [vmem:[%s407_s0 + $0x38] sm:$0xff] }
   0x3   :  { %v25_v7 = vmul.f32 %v223_v6, %v223_v6  ;;  %v230_v8 = vld [vmem:[%s407_s0 + $0x28] sm:$0xff]  ;;  %v28_v15 = vmul.f32 %v235_v9, %v235_v9  ;;  %v253_v17 = vld [vmem:[%s407_s0 + $0x30] sm:$0xff]  ;;  %v31_v20 = vmul.f32 %v248_v16, %v248_v16  ;;  %v269_v23 = vld [vmem:[%s407_s0 + $0x40] sm:$0xff] }
   0x4   :  { %v47_v10 = vsel %vm40_vm0, %v26_v3, 0.0  ;;  %v41_v11 = vsel %vm40_vm0, %v24_v4, 0.0  ;;  %v50_v12 = vsel %vm40_vm0, %v27_v5, 0.0  ;;  %v29_v14 = vmul.f32 %v230_v8, %v230_v8  ;;  %v264_v22 = vld [vmem:[%s407_s0 + $0x48] sm:$0xff]  ;;  %v280_v28 = vld [vmem:[%s407_s0 + $0x58] sm:$0xff]  ;;  %v285_v29 = vld [vmem:[%s407_s0 + $0x50] sm:$0xff] }
   0x5   :  { %48 = vadd.xlane.f32.xlu1 %v47_v10  ;;  %42 = vadd.xlane.f32.xlu0 %v41_v11  ;;  %v44_v13 = vsel %vm40_vm0, %v25_v7, 0.0  ;;  %v53_v19 = vsel %vm40_vm0, %v28_v15, 0.0  ;;  %v30_v21 = vmul.f32 %v253_v17, %v253_v17  ;;  %v62_v24 = vsel %vm40_vm0, %v31_v20, 0.0  ;;  %v296_v34 = vld [vmem:[%s407_s0 + $0x68] sm:$0xff]  ;;  %v301_v35 = vld [vmem:[%s407_s0 + $0x60] sm:$0xff]  ;;  %v312_v40 = vld [vmem:[%s407_s0 + $0x78] sm:$0xff] }
   0x6   :  { %v56_v18 = vsel %vm40_vm0, %v29_v14, 0.0  ;;  %v33_v26 = vmul.f32 %v264_v22, %v264_v22  ;;  %v32_v27 = vmul.f32 %v269_v23, %v269_v23  ;;  %v35_v32 = vmul.f32 %v280_v28, %v280_v28  ;;  %v317_v41 = vld [vmem:[%s407_s0 + $0x70] sm:$0xff] }
   0x7   :  { %v59_v25 = vsel %vm40_vm0, %v30_v21, 0.0  ;;  %v34_v33 = vmul.f32 %v285_v29, %v285_v29  ;;  %v37_v38 = vmul.f32 %v296_v34, %v296_v34  ;;  %v36_v39 = vmul.f32 %v301_v35, %v301_v35 }
   0x8   :  { %v68_v30 = vsel %vm40_vm0, %v33_v26, 0.0  ;;  %v65_v31 = vsel %vm40_vm0, %v32_v27, 0.0  ;;  %v74_v36 = vsel %vm40_vm0, %v35_v32, 0.0  ;;  %v39_v44 = vmul.f32 %v312_v40, %v312_v40 }
   0x9   :  { %51 = vadd.xlane.f32.xlu1 %v50_v12  ;;  %45 = vadd.xlane.f32.xlu0 %v44_v13  ;;  %v71_v37 = vsel %vm40_vm0, %v34_v33, 0.0  ;;  %v80_v42 = vsel %vm40_vm0, %v37_v38, 0.0  ;;  %v77_v43 = vsel %vm40_vm0, %v36_v39, 0.0  ;;  %v38_v45 = vmul.f32 %v317_v41, %v317_v41 }
   0xa   :  { %v86_v46 = vsel %vm40_vm0, %v39_v44, 0.0 }
   0xb   :  { %v83_v47 = vsel %vm40_vm0, %v38_v45, 0.0 }
   0xd   :  { %57 = vadd.xlane.f32.xlu1 %v56_v18  ;;  %54 = vadd.xlane.f32.xlu0 %v53_v19 }
  0x11   :  { %63 = vadd.xlane.f32.xlu1 %v62_v24  ;;  %60 = vadd.xlane.f32.xlu0 %v59_v25 }
  0x15   :  { %69 = vadd.xlane.f32.xlu1 %v68_v30  ;;  %66 = vadd.xlane.f32.xlu0 %v65_v31 }
  0x19   :  { %75 = vadd.xlane.f32.xlu1 %v74_v36  ;;  %72 = vadd.xlane.f32.xlu0 %v71_v37 }
  0x1d   :  { %81 = vadd.xlane.f32.xlu1 %v80_v42  ;;  %78 = vadd.xlane.f32.xlu0 %v77_v43 }
  0x21   :  { %87 = vadd.xlane.f32.xlu1 %v86_v46  ;;  %84 = vadd.xlane.f32.xlu0 %v83_v47 }
  0x92   :  { %v49_v48 = vpop.xlane.xlu1 %48  ;;  %v43_v49 = vpop.xlane.xlu0 %42 }
  0x93   :  { %v91_v50 = vmax.f32 %v49_v48, 1e-24  ;;  %v89_v51 = vmax.f32 %v43_v49, 1e-24 }
  0x95   :  { %157 = vrsqrt.f32 %v91_v50 }
  0x96   :  { %159 = vrsqrt.f32 %v89_v51  ;;  %v52_v52 = vpop.xlane.xlu1 %51  ;;  %v46_v53 = vpop.xlane.xlu0 %45 }
  0x97   :  { %v92_v54 = vmax.f32 %v52_v52, 1e-24  ;;  %v90_v55 = vmax.f32 %v46_v53, 1e-24 }
  0x99   :  { %161 = vrsqrt.f32 %v92_v54 }
  0x9a   :  { %163 = vrsqrt.f32 %v90_v55  ;;  %v58_v56 = vpop.xlane.xlu1 %57  ;;  %v55_v57 = vpop.xlane.xlu0 %54 }
  0x9b   :  { %v94_v58 = vmax.f32 %v58_v56, 1e-24  ;;  %v93_v59 = vmax.f32 %v55_v57, 1e-24 }
  0x9d   :  { %165 = vrsqrt.f32 %v94_v58 }
  0x9e   :  { %167 = vrsqrt.f32 %v93_v59  ;;  %v64_v60 = vpop.xlane.xlu1 %63  ;;  %v61_v61 = vpop.xlane.xlu0 %60 }
  0x9f   :  { %v158_v62 = vpop.eup %157  ;;  %v96_v63 = vmax.f32 %v64_v60, 1e-24  ;;  %v95_v3 = vmax.f32 %v61_v61, 1e-24 }
  0xa0   :  { %v160_v4 = vpop.eup %159  ;;  %v123_v5 = vmul.f32 %v158_v62, %v202_v0 }
  0xa1   :  { %v121_v7 = vmul.f32 %v160_v4, %v207_v1  ;;  %169 = vrsqrt.f32 %v96_v63 }
  0xa2   :  { %139 = vst.msk [vmem:[%s408_s1 + $0x10] sm:$0xff] %vm40_vm0, %v123_v5  ;;  %171 = vrsqrt.f32 %v95_v3  ;;  %v70_v10 = vpop.xlane.xlu1 %69  ;;  %v67_v11 = vpop.xlane.xlu0 %66 }
  0xa3   :  { %v162_v12 = vpop.eup %161  ;;  %137 = vst.msk [vmem:[%s408_s1] sm:$0xff] %vm40_vm0, %v121_v7  ;;  %v98_v13 = vmax.f32 %v70_v10, 1e-24  ;;  %v97_v14 = vmax.f32 %v67_v11, 1e-24 }
  0xa4   :  { %v164_v0 = vpop.eup %163  ;;  %v124_v1 = vmul.f32 %v162_v12, %v212_v2 }
  0xa5   :  { %v122_v15 = vmul.f32 %v164_v0, %v223_v6  ;;  %173 = vrsqrt.f32 %v98_v13 }
  0xa6   :  { %140 = vst.msk [vmem:[%s408_s1 + $0x18] sm:$0xff] %vm40_vm0, %v124_v1  ;;  %175 = vrsqrt.f32 %v97_v14  ;;  %v76_v18 = vpop.xlane.xlu1 %75  ;;  %v73_v19 = vpop.xlane.xlu0 %72 }
  0xa7   :  { %v166_v20 = vpop.eup %165  ;;  %138 = vst.msk [vmem:[%s408_s1 + $0x8] sm:$0xff] %vm40_vm0, %v122_v15  ;;  %v100_v21 = vmax.f32 %v76_v18, 1e-24  ;;  %v99_v24 = vmax.f32 %v73_v19, 1e-24 }
  0xa8   :  { %v168_v2 = vpop.eup %167  ;;  %v126_v6 = vmul.f32 %v166_v20, %v230_v8 }
  0xa9   :  { %v125_v25 = vmul.f32 %v168_v2, %v235_v9  ;;  %177 = vrsqrt.f32 %v100_v21 }
  0xaa   :  { %142 = vst.msk [vmem:[%s408_s1 + $0x28] sm:$0xff] %vm40_vm0, %v126_v6  ;;  %179 = vrsqrt.f32 %v99_v24  ;;  %v82_v26 = vpop.xlane.xlu1 %81  ;;  %v79_v27 = vpop.xlane.xlu0 %78 }
  0xab   :  { %v170_v30 = vpop.eup %169  ;;  %141 = vst.msk [vmem:[%s408_s1 + $0x20] sm:$0xff] %vm40_vm0, %v125_v25  ;;  %v102_v31 = vmax.f32 %v82_v26, 1e-24  ;;  %v101_v32 = vmax.f32 %v79_v27, 1e-24 }
  0xac   :  { %v172_v8 = vpop.eup %171  ;;  %v128_v9 = vmul.f32 %v170_v30, %v248_v16 }
  0xad   :  { %v127_v33 = vmul.f32 %v172_v8, %v253_v17  ;;  %181 = vrsqrt.f32 %v102_v31 }
  0xae   :  { %144 = vst.msk [vmem:[%s408_s1 + $0x38] sm:$0xff] %vm40_vm0, %v128_v9  ;;  %183 = vrsqrt.f32 %v101_v32  ;;  %v88_v36 = vpop.xlane.xlu1 %87  ;;  %v85_v37 = vpop.xlane.xlu0 %84 }
  0xaf   :  { %v174_v38 = vpop.eup %173  ;;  %143 = vst.msk [vmem:[%s408_s1 + $0x30] sm:$0xff] %vm40_vm0, %v127_v33  ;;  %v104_v39 = vmax.f32 %v88_v36, 1e-24  ;;  %v103_v42 = vmax.f32 %v85_v37, 1e-24 }
  0xb0   :  { %v176_v16 = vpop.eup %175  ;;  %v130_v17 = vmul.f32 %v174_v38, %v264_v22 }
  0xb1   :  { %v129_v43 = vmul.f32 %v176_v16, %v269_v23  ;;  %185 = vrsqrt.f32 %v104_v39 }
  0xb2   :  { %146 = vst.msk [vmem:[%s408_s1 + $0x48] sm:$0xff] %vm40_vm0, %v130_v17  ;;  %187 = vrsqrt.f32 %v103_v42 }
  0xb3   :  { %v178_v44 = vpop.eup %177  ;;  %145 = vst.msk [vmem:[%s408_s1 + $0x40] sm:$0xff] %vm40_vm0, %v129_v43 }
  0xb4   :  { %v180_v45 = vpop.eup %179  ;;  %v132_v46 = vmul.f32 %v178_v44, %v280_v28 }
  0xb5   :  { %v131_v22 = vmul.f32 %v180_v45, %v285_v29 }
  0xb6   :  { %148 = vst.msk [vmem:[%s408_s1 + $0x58] sm:$0xff] %vm40_vm0, %v132_v46 }
  0xb7   :  { %v182_v23 = vpop.eup %181  ;;  %147 = vst.msk [vmem:[%s408_s1 + $0x50] sm:$0xff] %vm40_vm0, %v131_v22 }
  0xb8   :  { %v184_v47 = vpop.eup %183  ;;  %v134_v48 = vmul.f32 %v182_v23, %v296_v34 }
  0xb9   :  { %v133_v49 = vmul.f32 %v184_v47, %v301_v35 }
  0xba   :  { %150 = vst.msk [vmem:[%s408_s1 + $0x68] sm:$0xff] %vm40_vm0, %v134_v48 }
  0xbb   :  { %v186_v28 = vpop.eup %185  ;;  %149 = vst.msk [vmem:[%s408_s1 + $0x60] sm:$0xff] %vm40_vm0, %v133_v49 }
  0xbc   :  { %v188_v29 = vpop.eup %187  ;;  %v136_v50 = vmul.f32 %v186_v28, %v312_v40 }
  0xbd   :  { %v135_v51 = vmul.f32 %v188_v29, %v317_v41 }
  0xbe   :  { %152 = vst.msk [vmem:[%s408_s1 + $0x78] sm:$0xff] %vm40_vm0, %v136_v50 }
  0xbf   :  { %151 = vst.msk [vmem:[%s408_s1 + $0x70] sm:$0xff] %vm40_vm0, %v135_v51 }

</bundles_post_ra>
